<compile_context>
chip_gen: v6e
topology: v6e:2x2x1
jax: 0.10.0
libtpu: 0.0.40
codegen_flags: <defaults>
</compile_context>

<pallas_src>
import functools

import jax
import jax.numpy as jnp
import numpy as np
from jax.experimental import pallas as pl
from jax.experimental.pallas import tpu as pltpu


def _round_up(x, m):
    return ((x + m - 1) // m) * m


def _kernel_body(label_ref, x_ref, w_ref, b_ref, bits_ref, logits_ref, loss_ref,
                 *, keep_threshold, inv_keep):
    x = x_ref[...]                                     # [B, D], input dtype (f32/bf16)

    # ---- dropout: keep with prob (1-p), scale by 1/(1-p) (torch.nn.Dropout) ----
    if bits_ref is not None:
        # bits are uniform int32; P(bits >= keep_threshold) == 1 - p  (2^-32 resolution)
        keep = bits_ref[...] >= jnp.int32(keep_threshold)
        x = jnp.where(keep, x * jnp.asarray(inv_keep, x.dtype), jnp.zeros((), x.dtype))

    # ---- linear: logits = x @ W_t + b  (W_t already [D, Cp]; no in-kernel transpose) ----
    logits = jnp.dot(x, w_ref[...], preferred_element_type=jnp.float32) + b_ref[...]
    logits_ref[...] = logits                           # [B, Cp] f32, lane-dense store

    # ---- cross entropy (mean over batch); padded classes carry bias=-1e30 -> exp()==0 ----
    B, Cp = logits.shape
    m = jnp.max(logits, axis=-1, keepdims=True)                                # [B, 1]
    lse = m + jnp.log(jnp.sum(jnp.exp(logits - m), axis=-1, keepdims=True))    # [B, 1]
    iota = jax.lax.broadcasted_iota(jnp.int32, (B, Cp), 1)
    lab = jnp.concatenate(
        [jnp.full((1, Cp), label_ref[i], dtype=jnp.int32) for i in range(B)], axis=0)
    picked = jnp.sum(jnp.where(iota == lab, logits, 0.0), axis=-1, keepdims=True)
    loss_ref[0] = jnp.sum(lse - picked) * jnp.float32(1.0 / B)


def _kernel_with_dropout(label_ref, x_ref, w_ref, b_ref, bits_ref,
                         logits_ref, loss_ref, *, keep_threshold, inv_keep):
    _kernel_body(label_ref, x_ref, w_ref, b_ref, bits_ref, logits_ref, loss_ref,
                 keep_threshold=keep_threshold, inv_keep=inv_keep)


def _kernel_no_dropout(label_ref, x_ref, w_ref, b_ref, logits_ref, loss_ref):
    _kernel_body(label_ref, x_ref, w_ref, b_ref, None, logits_ref, loss_ref,
                 keep_threshold=0, inv_keep=1.0)


def classifier_forward(x, w, b, label, *, dropout_p, training, rng_key=None):
    """Pallas version of Classifier.forward. Returns {'loss', 'output'}.

    x: [B, D] activations (f32 or bf16), w: [C, D] (PyTorch layout), b: [C],
    label: [B] int. Dropout is active only when training=True and dropout_p > 0.
    """
    B, D = x.shape
    C, Dw = w.shape
    assert D == Dw

    Cp = _round_up(max(C, 128), 128)                   # lane-dense class dimension

    w_t = jnp.pad(w.T, ((0, 0), (0, Cp - C)))          # [D, Cp], transpose done outside
    b_pad = jnp.pad(b.astype(jnp.float32), (0, Cp - C),
                    constant_values=jnp.float32(-1e30)).reshape(1, Cp)
    label_i32 = label.astype(jnp.int32)                # [B], lives in SMEM

    apply_dropout = bool(training) and float(dropout_p) > 0.0

    smem = pl.BlockSpec(memory_space=pltpu.MemorySpace.SMEM)
    vmem = pl.BlockSpec(memory_space=pltpu.MemorySpace.VMEM)

    if apply_dropout:
        if rng_key is None:
            rng_key = jax.random.PRNGKey(0)
        bits_u32 = jax.random.bits(rng_key, (B, D), dtype=jnp.uint32)
        bits = jax.lax.bitcast_convert_type(bits_u32, jnp.int32)   # [B, D] int32
        keep_threshold = int(round(float(dropout_p) * 2.0 ** 32)) - 2 ** 31
        keep_threshold = max(-2 ** 31, min(keep_threshold, 2 ** 31 - 1))
        kernel = functools.partial(_kernel_with_dropout,
                                   keep_threshold=keep_threshold,
                                   inv_keep=1.0 / (1.0 - float(dropout_p)))
        inputs = (label_i32, x, w_t, b_pad, bits)
        in_specs = [smem, vmem, vmem, vmem, vmem]
    else:
        kernel = _kernel_no_dropout
        inputs = (label_i32, x, w_t, b_pad)
        in_specs = [smem, vmem, vmem, vmem]

    logits_pad, loss = pl.pallas_call(
        kernel,
        out_shape=(
            jax.ShapeDtypeStruct((B, Cp), jnp.float32),   # padded logits (VMEM)
            jax.ShapeDtypeStruct((1,), jnp.float32),      # scalar loss (SMEM)
        ),
        in_specs=in_specs,
        out_specs=(vmem, smem),
    )(*inputs)

    return {"loss": loss[0], "output": logits_pad[:, :C]}


if __name__ == "__main__":
    # Small shapes consistent with the module: batch=8, input_size=32, num_classes=16.
    B, D, C = 8, 32, 16
    dropout_p = 0.5

    key = jax.random.PRNGKey(0)
    kx, kw, kb, kl, kd = jax.random.split(key, 5)
    x = jax.random.normal(kx, (B, D), dtype=jnp.float32)
    w = jax.random.normal(kw, (C, D), dtype=jnp.float32) * (1.0 / jnp.sqrt(D))
    b = jax.random.normal(kb, (C,), dtype=jnp.float32) * 0.01
    label = jax.random.randint(kl, (B,), 0, C, dtype=jnp.int32)

    # ---- eval path (dropout = identity): check against plain-JAX reference ----
    out_eval = classifier_forward(x, w, b, label, dropout_p=dropout_p, training=False)
    jax.block_until_ready(out_eval["loss"])

    ref_logits = jnp.dot(x, w.T, precision=jax.lax.Precision.HIGHEST) + b
    ref_lse = jax.nn.logsumexp(ref_logits, axis=-1)
    ref_picked = jnp.take_along_axis(ref_logits, label[:, None], axis=-1)[:, 0]
    ref_loss = jnp.mean(ref_lse - ref_picked)

    assert out_eval["output"].shape == (B, C)
    np.testing.assert_allclose(np.asarray(out_eval["output"]), np.asarray(ref_logits),
                               rtol=1e-2, atol=1e-2)
    np.testing.assert_allclose(float(out_eval["loss"]), float(ref_loss),
                               rtol=1e-2, atol=1e-2)

    # ---- train path (dropout active); bf16 activations/weights, no up-cast ----
    out_train = classifier_forward(x.astype(jnp.bfloat16), w.astype(jnp.bfloat16), b,
                                   label, dropout_p=dropout_p, training=True,
                                   rng_key=kd)
    jax.block_until_ready(out_train["loss"])
    assert out_train["output"].shape == (B, C)
    assert bool(jnp.isfinite(out_train["loss"]))
    assert bool(jnp.all(jnp.isfinite(out_train["output"])))

    print("KERNEL_OK")
</pallas_src>

<mosaic_0001>
module attributes {stable_mosaic.version = 11 : i64} {
  func.func @_kernel_no_dropout(%arg0: memref<8xi32, #tpu.memory_space<smem>>, %arg1: memref<8x32xf32, #tpu.memory_space<vmem>>, %arg2: memref<32x128xf32, #tpu.memory_space<vmem>>, %arg3: memref<1x128xf32, #tpu.memory_space<vmem>>, %arg4: memref<8x128xf32, #tpu.memory_space<vmem>>, %arg5: memref<1xf32, #tpu.memory_space<smem>>) attributes {dimension_semantics = [], scalar_prefetch = 0 : i64, scratch_operands = 0 : i64, tpu.core_type = #tpu.core_type<tc>} {
    %c0 = arith.constant 0 : index
    %c0_0 = arith.constant 0 : index
    %0 = vector.load %arg1[%c0, %c0_0] : memref<8x32xf32, #tpu.memory_space<vmem>>, vector<8x32xf32>
    %c0_1 = arith.constant 0 : index
    %c0_2 = arith.constant 0 : index
    %1 = vector.load %arg2[%c0_1, %c0_2] : memref<32x128xf32, #tpu.memory_space<vmem>>, vector<32x128xf32>
    %cst = arith.constant dense<0.000000e+00> : vector<8x128xf32>
    %2 = tpu.matmul %0, %1, %cst {dimension_numbers = #tpu.dot_dimension_numbers<[1], [0], [0], [1], [0, 0, 1, 1], [], []>} : vector<8x32xf32>, vector<32x128xf32>, vector<8x128xf32> -> vector<8x128xf32>
    %c0_3 = arith.constant 0 : index
    %c0_4 = arith.constant 0 : index
    %3 = vector.load %arg3[%c0_3, %c0_4] : memref<1x128xf32, #tpu.memory_space<vmem>>, vector<1x128xf32>
    %4 = vector.broadcast %3 : vector<1x128xf32> to vector<8x128xf32>
    %5 = arith.addf %2, %4 : vector<8x128xf32>
    %c0_5 = arith.constant 0 : index
    %c0_6 = arith.constant 0 : index
    %6 = vector.load %arg4[%c0_5, %c0_6] : memref<8x128xf32, #tpu.memory_space<vmem>>, vector<8x128xf32>
    tpu.vector_store %arg4[%c0_5, %c0_6], %5 {strides = array<i32>} : memref<8x128xf32, #tpu.memory_space<vmem>>, vector<8x128xf32>,
    %cst_7 = arith.constant dense<0xFF800000> : vector<8xf32>
    %7 = vector.multi_reduction <maximumf>, %5, %cst_7 [1] : vector<8x128xf32> to vector<8xf32>
    %8 = vector.shape_cast %7 : vector<8xf32> to vector<8x1xf32>
    %9 = vector.broadcast %8 : vector<8x1xf32> to vector<8x128xf32>
    %10 = arith.subf %5, %9 : vector<8x128xf32>
    %11 = math.exp %10 : vector<8x128xf32>
    %cst_8 = arith.constant dense<0.000000e+00> : vector<8xf32>
    %12 = vector.multi_reduction <add>, %11, %cst_8 [1] : vector<8x128xf32> to vector<8xf32>
    %13 = vector.shape_cast %12 : vector<8xf32> to vector<8x1xf32>
    %14 = math.log %13 : vector<8x1xf32>
    %15 = arith.addf %8, %14 : vector<8x1xf32>
    %16 = tpu.iota {dimensions = array<i32: 1>} : vector<8x128xi32>
    %c0_9 = arith.constant 0 : index
    %17 = memref.load %arg0[%c0_9] : memref<8xi32, #tpu.memory_space<smem>>
    %18 = vector.broadcast %17 : i32 to vector<1x128xi32>
    %c1 = arith.constant 1 : index
    %19 = memref.load %arg0[%c1] : memref<8xi32, #tpu.memory_space<smem>>
    %20 = vector.broadcast %19 : i32 to vector<1x128xi32>
    %c2 = arith.constant 2 : index
    %21 = memref.load %arg0[%c2] : memref<8xi32, #tpu.memory_space<smem>>
    %22 = vector.broadcast %21 : i32 to vector<1x128xi32>
    %c3 = arith.constant 3 : index
    %23 = memref.load %arg0[%c3] : memref<8xi32, #tpu.memory_space<smem>>
    %24 = vector.broadcast %23 : i32 to vector<1x128xi32>
    %c4 = arith.constant 4 : index
    %25 = memref.load %arg0[%c4] : memref<8xi32, #tpu.memory_space<smem>>
    %26 = vector.broadcast %25 : i32 to vector<1x128xi32>
    %c5 = arith.constant 5 : index
    %27 = memref.load %arg0[%c5] : memref<8xi32, #tpu.memory_space<smem>>
    %28 = vector.broadcast %27 : i32 to vector<1x128xi32>
    %c6 = arith.constant 6 : index
    %29 = memref.load %arg0[%c6] : memref<8xi32, #tpu.memory_space<smem>>
    %30 = vector.broadcast %29 : i32 to vector<1x128xi32>
    %c7 = arith.constant 7 : index
    %31 = memref.load %arg0[%c7] : memref<8xi32, #tpu.memory_space<smem>>
    %32 = vector.broadcast %31 : i32 to vector<1x128xi32>
    %33 = tpu.concatenate %18, %20, %22, %24, %26, %28, %30, %32 in 0 : vector<1x128xi32>, vector<1x128xi32>, vector<1x128xi32>, vector<1x128xi32>, vector<1x128xi32>, vector<1x128xi32>, vector<1x128xi32>, vector<1x128xi32> -> vector<8x128xi32>
    %34 = arith.cmpi eq, %16, %33 : vector<8x128xi32>
    %cst_10 = arith.constant 0.000000e+00 : f32
    %35 = vector.broadcast %cst_10 : f32 to vector<8x128xf32>
    %36 = arith.select %34, %5, %35 : vector<8x128xi1>, vector<8x128xf32>
    %cst_11 = arith.constant dense<0.000000e+00> : vector<8xf32>
    %37 = vector.multi_reduction <add>, %36, %cst_11 [1] : vector<8x128xf32> to vector<8xf32>
    %38 = vector.shape_cast %37 : vector<8xf32> to vector<8x1xf32>
    %39 = arith.subf %15, %38 : vector<8x1xf32>
    %40 = vector.shape_cast %39 : vector<8x1xf32> to vector<1x8x1xf32>
    %cst_12 = arith.constant dense<0.000000e+00> : vector<1xf32>
    %41 = vector.multi_reduction <add>, %40, %cst_12 [1, 2] : vector<1x8x1xf32> to vector<1xf32>
    %42 = vector.shape_cast %41 : vector<1xf32> to vector<1x1x1xf32>
    %43 = vector.extract %42[0, 0, 0] : f32 from vector<1x1x1xf32>
    %cst_13 = arith.constant 1.250000e-01 : f32
    %44 = arith.mulf %43, %cst_13 : f32
    %c0_14 = arith.constant 0 : index
    %45 = memref.load %arg5[%c0_14] : memref<1xf32, #tpu.memory_space<smem>>
    memref.store %44, %arg5[%c0_14] : memref<1xf32, #tpu.memory_space<smem>>
    return
  }
}

</mosaic_0001>

<bundles_post_ra>
// kernel: tpu_custom_call.1
= control target key start
LH: loop header
LB: loop body
LE: loop exit
PB: predicated region body
PF: predicated region fallthrough
CT: control target
= control target key end

     0   :  { %11 = vsyncpa [#allocation5], 0  ;;  %s419_s0 = inlined_call_operand.hbm [shape: s32[8], index: 0, kind: input, shape index: {}]   ;;  %s420_s1 = inlined_call_operand.hbm [shape: f32[8,32], index: 1, kind: input, shape index: {}]   ;;  %s421_s2 = inlined_call_operand.hbm [shape: f32[32,128], index: 2, kind: input, shape index: {}]   ;;  %s422_s3 = inlined_call_operand.vmem [shape: f32[1,128], index: 3, kind: input, shape index: {}]   ;;  %s423_s4 = inlined_call_operand.hbm [shape: f32[8,128], index: 4, kind: output, shape index: {0}]   ;;  %s424_s5 = inlined_call_operand.hbm [shape: f32[1], index: 5, kind: output, shape index: {1}]  }
   0x1   :  { %12 = vsyncpa [#allocation3], 0 }
   0x2   :  { %13 = vsyncpa [#allocation9], 0 }
   0x3   :  { %14 = vsyncpa [#allocation4], 0 }
   0x4   :  { %15 = vsyncpa [#allocation6], 0  ;;  %s362_s18 = smov [#allocation2]   ;;  %s363_s21 = smov [#allocation7]  }
   0x5   :  { %23 = dma.hbm_to_smem %s419_s0, 16, %s362_s18, [#allocation5]  }
   0x6   :  { %s30_s22 = sshll.u32 %s363_s21, 4  ;;  %s364_s23 = smov [#allocation8]   ;;  %s31_s22 = int_to_ptr.vmem [resolvable:$true] %s30_s22 }
   0x7   :  { %s39_s24 = sshll.u32 %s364_s23, 4  ;;  %s292_s25 = scalar_lea.vmem %s31_s22, 128  ;;  %s40_s24 = int_to_ptr.vmem [resolvable:$true] %s39_s24 }
   0x8   :  { %p293_p0 = scmp.ne.s32.totalorder %s31_s22, %s292_s25  ;;  %p297_p1 = scmp.lt.s32.totalorder %s31_s22, %s31_s22 }
   0x9   :  { %p298_p2 = scmp.lt.s32.totalorder %s292_s25, %s292_s25 }
   0xb   :  { %p299_p3 = por %p298_p2, %p297_p1 }
   0xd   :  { %p300_p4 = pnand %p299_p3, %p293_p0 }
   0xf   :  { %303 = shalt.err (!%p300_p4)
}
  0x10   :  { %33 = dma.hbm_to_vmem [thread:$0]  %s420_s1, 128, %s31_s22, [#allocation3]  }
  0x11   :  { %s312_s28 = scalar_lea.vmem %s40_s24, 512  ;;  %p317_p6 = scmp.lt.s32.totalorder %s40_s24, %s40_s24 }
  0x12   :  { %p313_p5 = scmp.ne.s32.totalorder %s40_s24, %s312_s28  ;;  %p318_p7 = scmp.lt.s32.totalorder %s312_s28, %s312_s28 }
  0x14   :  { %p319_p8 = por %p318_p7, %p317_p6 }
  0x16   :  { %p320_p9 = pnand %p319_p8, %p313_p5 }
  0x18   :  { %323 = shalt.err (!%p320_p9)
}
  0x19   :  { %s365_s0 = smov 128   ;;  %s366_s29 = smov 8  }
  0x1a   :  { %45 = dma.hbm_to_vmem [thread:$0]  %s421_s2, 512, %s40_s24, [#allocation9], %s365_s0, %s365_s0, %s366_s29  }
  0x1b   :  { %352 = dma.done.wait [#allocation5], 16  }
  0x1c   :  { %353 = vsyncadd [#allocation5], 4294967280 }
  0x1d   :  { %354 = dma.done.wait [#allocation3], 128  }
  0x1e   :  { %355 = vsyncadd [#allocation3], 4294967168 }
  0x1f   :  { %356 = dma.done.wait [#allocation9], 512  }
  0x20   :  { %357 = vsyncadd [#allocation9], 4294966784 }
  0x21   :  { %57 = sfence }
  0x22   :  { %v62_v0 = vld [vmem:[#allocation8 + $0x18] sm:$0xff]  ;;  %v367_v1 = vmov 0.0   ;;  %v61_v2 = vld [vmem:[#allocation8 + $0x10] sm:$0xff]  ;;  %vm368_vm0 = vmmov 0   ;;  %v60_v3 = vld [vmem:[#allocation8 + $0x8] sm:$0xff]  ;;  %vm70_vm1 = vcmask 261120   ;;  %v155_v18 = vlaneseq }
  0x23   :  { %250 = vmatprep.subr.mxu0 %v367_v1  ;;  %258 = vmatprep.mubr.msk.f32.mxu0 %vm368_vm0, %v367_v1  ;;  %v59_v4 = vld [vmem:[#allocation8] sm:$0xff]  ;;  %v58_v5 = vld [vmem:[#allocation7] sm:$0xff]  ;;  %s157_s1 = sld [smem:[#allocation2]]  ;;  %vm173_vm2 = vcmask 1040384   ;;  %vm175_vm3 = vcmask 1041408   ;;  %vm177_vm4 = vcmask 1042432  }
  0x24   :  { %251 = vmatpush3.msra.mxu0 %v62_v0  ;;  %s238_s2 = sld [smem:[#allocation2 + $0x1]]  ;;  %vm179_vm5 = vcmask 1043456   ;;  %vm181_vm6 = vcmask 1044480   ;;  %vm183_vm7 = vcmask 1045504   ;;  %vm185_vm8 = vcmask 1046528  }
  0x25   :  { %252 = vmatprep.subr.mxu0 %v367_v1  ;;  %s239_s7 = sld [smem:[#allocation2 + $0x2]]  ;;  %v156_v21 = vand.u32 127, %v155_v18  ;;  %v236_v23 = vld [vmem:[%s422_s3] ss:$0 sm:$0xff]  ;;  %vm192_vm10 = vcmask 7168   ;;  %s369_s3 = smov [#allocation10]  }
  0x26   :  { %253 = vmatpush3.msra.mxu0 %v61_v2  ;;  %s240_s8 = sld [smem:[#allocation2 + $0x3]]  ;;  %s212_s15 = sshll.u32 %s369_s3, 4  ;;  %s213_s15 = int_to_ptr.vmem [resolvable:$true] %s212_s15 }
  0x27   :  { %254 = vmatprep.subr.mxu0 %v367_v1  ;;  %s241_s9 = sld [smem:[#allocation2 + $0x4]]  ;;  %s324_s16 = scalar_lea.vmem %s213_s15, 128 }
  0x28   :  { %255 = vmatpush3.msra.mxu0 %v60_v3  ;;  %s242_s10 = sld [smem:[#allocation2 + $0x5]]  ;;  %p325_p10 = scmp.ne.s32.totalorder %s213_s15, %s324_s16 }
  0x29   :  { %256 = vmatprep.subr.mxu0 %v367_v1  ;;  %v158_v6 = vstv %s157_s1  ;;  %s243_s11 = sld [smem:[#allocation2 + $0x6]]  ;;  %p329_p11 = scmp.lt.s32.totalorder %s213_s15, %s213_s15 }
  0x2a   :  { %257 = vmatpush3.msra.mxu0 %v59_v4  ;;  %v160_v7 = vstv %s238_s2  ;;  %s244_s12 = sld [smem:[#allocation2 + $0x7]]  ;;  %p330_p12 = scmp.lt.s32.totalorder %s324_s16, %s324_s16 }
  0x2b   :  { %259 = vmatmul.mubr.msk.f32.vlgmr.msra.gmra.mxu0 %vm70_vm1, %v58_v5  ;;  %v162_v8 = vstv %s239_s7  ;;  %v174_v9 = vsel %vm173_vm2, %v158_v6, %v160_v7 }
  0x2c   :  { %v164_v10 = vstv %s240_s8  ;;  %v176_v11 = vsel %vm175_vm3, %v174_v9, %v162_v8  ;;  %p331_p13 = por %p330_p12, %p329_p11 }
  0x2d   :  { %v166_v12 = vstv %s241_s9  ;;  %v178_v13 = vsel %vm177_vm4, %v176_v11, %v164_v10 }
  0x2e   :  { %v168_v14 = vstv %s242_s10  ;;  %v180_v15 = vsel %vm179_vm5, %v178_v13, %v166_v12  ;;  %p332_p0 = pnand %p331_p13, %p325_p10 }
  0x2f   :  { %v170_v16 = vstv %s243_s11  ;;  %v182_v17 = vsel %vm181_vm6, %v180_v15, %v168_v14 }
  0x30   :  { %v172_v19 = vstv %s244_s12  ;;  %v184_v20 = vsel %vm183_vm7, %v182_v17, %v170_v16 }
  0x31   :  { %v186_v22 = vsel %vm185_vm8, %v184_v20, %v172_v19 }
  0x32   :  { %vm187_vm9 = vcmp.eq.s32.totalorder %v156_v21, %v186_v22 }
  0xeb   :  { %v140_v24 = vpop.f32.mrf.mxu0 }
  0xec   :  { %v141_v25 = vadd.f32 %v236_v23, %v140_v24 }
  0xed   :  { %v260_v26 = vpop.f32.mrf.mxu0 }
  0xee   :  { %144 = vst [vmem:[#allocation10] sm:$0xff] %v141_v25  ;;  %145 = vmax.xlane.f32.xlu0 %v141_v25  ;;  %v188_v27 = vsel %vm187_vm9, %v141_v25, 0.0 }
  0xef   :  { %189 = vadd.xlane.f32.xlu1 %v188_v27 }
 0x177   :  { %v146_v28 = vpop.xlane.xlu0 %145 }
 0x178   :  { %v147_v29 = vsub.f32 %v141_v25, %v146_v28  ;;  %v190_v36 = vpop.xlane.xlu1 %189 }
 0x17a   :  { %v148_v30 = vmul.f32 1.442695, %v147_v29 }
 0x17c   :  { %272 = vpow2.f32 %v148_v30 }
 0x189   :  { %v273_v31 = vpop.eup %272 }
 0x18a   :  { %150 = vadd.xlane.f32.xlu0 %v273_v31 }
 0x213   :  { %v151_v32 = vpop.xlane.xlu0 %150 }
 0x214   :  { %274 = vlog2.f32 %v151_v32 }
 0x221   :  { %v275_v33 = vpop.eup %274 }
 0x222   :  { %v153_v34 = vmul.f32 0.6931472, %v275_v33 }
 0x224   :  { %v154_v35 = vadd.f32 %v153_v34, %v146_v28 }
 0x226   :  { %v191_v37 = vsub.f32 %v154_v35, %v190_v36 }
 0x228   :  { %v193_v38 = vsel %vm192_vm10, %v191_v37, 0.0 }
 0x229   :  { %194 = vadd.xlane.f32.xlu1 %v193_v38 }
 0x22a   :  { %335 = shalt.err (!%p332_p0)
}
 0x22b   :  { %215 = dma.vmem_to_hbm [thread:$0]  %s213_s15, 128, %s423_s4, [#allocation4]  }
 0x22c   :  { %s370_s21 = smov [#allocation11]  }
 0x2b2   :  { %v195_v39 = vpop.xlane.xlu1 %194 }
 0x2b3   :  { %v196_v40 = vrot.slane %v195_v39, 4 }
 0x2b5   :  { %v197_v41 = vadd.f32 %v196_v40, %v195_v39 }
 0x2b7   :  { %v198_v42 = vrot.slane %v197_v41, 2 }
 0x2b9   :  { %v199_v43 = vadd.f32 %v198_v42, %v197_v41 }
 0x2bb   :  { %v200_v44 = vrot.slane %v199_v43, 1 }
 0x2bd   :  { %v201_v45 = vadd.f32 %v200_v44, %v199_v43 }
 0x2bf   :  { %261 = vpush %v201_v45 }
 0x2f0   :  { %s262_s19 = spop %261 }
 0x2f1   :  { %s203_s20 = smul.f32 0.125, %s262_s19 }
 0x2f3   :  { %205 = sst [smem:[#allocation11]] %s203_s20 }
 0x2f4   :  { %223 = dma.smem_to_hbm %s370_s21, 16, %s424_s5, [#allocation6]  }
 0x2f5   :  { %358 = dma.done.wait [#allocation4], 128  }
 0x2f6   :  { %359 = vsyncadd [#allocation4], 4294967168 }
 0x2f7   :  { %360 = dma.done.wait [#allocation6], 16  }
 0x2f8   :  { %361 = vsyncadd [#allocation6], 4294967280 }
 0x2f9   :  { %230 = sfence }
 0x2fa   :  { %231 = vsyncpa [#allocation3], 1 }
 0x2fb   :  { %232 = vsyncpa [#allocation9], 1 }
 0x2fc   :  { %233 = vsyncpa [#allocation4], 1 }
 0x2fd   :  { %234 = vsyncpa [#allocation5], 1 }
 0x2fe   :  { %235 = vsyncpa [#allocation6], 1 }

</bundles_post_ra>
